<compile_context>
chip_gen: v7x
topology: tpu7x:2x2x1
jax: 0.10.0
libtpu: 0.0.40
codegen_flags: <defaults>
</compile_context>

<pallas_src>
import math

import numpy as np
import jax
import jax.numpy as jnp
from jax.experimental import pallas as pl
from jax.experimental.pallas import tpu as pltpu

_SAFE_DIV_EPS = 1e-7
_SIG_EXPONENT = 10.0
_SIG_MAX_VALUE = 2.0
_SIG_THRESHOLD = 1e-7
_LOG_EXP = math.log(_SIG_EXPONENT)


def _harmonic_head_kernel(x_ref, w_ref, b_ref, dism_ref, ampm_ref, out_ref):
    # x_ref:    (tm, in_size)   VMEM (pipelined over rows)
    # w_ref:    (in_size, Hp)   VMEM, resident (dis cols first, amp col at n_harms, rest 0)
    # b_ref:    (1, Hp) f32     VMEM, resident
    # dism_ref: (1, Hp) f32     1.0 on harmonic-distribution lanes, else 0.0
    # ampm_ref: (1, Hp) f32     1.0 on the global-amp lane, else 0.0
    # out_ref:  (tm, Hp)        lanes 0..n_harms-1 = dis_norm, lane n_harms = amp, rest 0

    # Linear on the MXU: native input dtype, f32 accumulation.
    z = jnp.dot(x_ref[...], w_ref[...], preferred_element_type=jnp.float32) + b_ref[...]

    # modified_sigmoid: max_value * sigmoid(z)**log(10) + threshold
    #   sigmoid(z)**a = exp(-a * softplus(-z)),  stable softplus (no intermediate inf).
    softplus_neg = jnp.maximum(-z, 0.0) + jnp.log1p(jnp.exp(-jnp.abs(z)))
    s = _SIG_MAX_VALUE * jnp.exp(-_LOG_EXP * softplus_neg) + _SIG_THRESHOLD

    # Normalize the harmonic distribution; amp and padded lanes never enter the sum.
    s_dis = s * dism_ref[...]
    denom = jnp.sum(s_dis, axis=-1, keepdims=True)
    inv = 1.0 / (denom + _SAFE_DIV_EPS)

    out = s * ampm_ref[...] + s_dis * inv
    out_ref[...] = out.astype(out_ref.dtype)


def harmonic_head(x, weight, bias, *, tm=1024, out_dtype=jnp.float32):
    """x: [B, T, in_size]; weight: [n_harms+1, in_size]; bias: [n_harms+1]."""
    B, T, in_size = x.shape
    H = weight.shape[0]          # n_harms + 1
    n_harms = H - 1
    M = B * T

    # Lane-dense padded output width (multiple of 128).
    Hp = ((H + 127) // 128) * 128

    m_rounded = ((M + 7) // 8) * 8

    # Row tile: multiple of 8, capped by a VMEM budget that is safe on v7x
    # (double-buffered x + out tiles kept under ~24 MiB).
    x_item = jnp.dtype(x.dtype).itemsize
    out_item = jnp.dtype(out_dtype).itemsize
    row_bytes = 2 * (in_size * x_item + Hp * out_item)
    vmem_budget = 24 * 1024 * 1024
    tm_vmem = max(8, (vmem_budget // max(row_bytes, 1)) // 8 * 8)

    tm = min(int(tm), tm_vmem, m_rounded)
    # Keep at least 2 grid steps when there are enough rows, so the "parallel"
    # axis can shard across v7x's two TensorCores.
    if m_rounded >= 16 and tm >= m_rounded:
        tm = ((m_rounded // 2 + 7) // 8) * 8
    tm = max(8, (tm // 8) * 8)

    x2 = x.reshape(M, in_size)

    # Weight / bias reordered (dis first, amp last) and zero-padded to Hp lanes.
    pad_cols = Hp - H
    w_pad = jnp.concatenate([weight[1:], weight[:1]], axis=0).T        # (in_size, H)
    w_pad = jnp.pad(w_pad, ((0, 0), (0, pad_cols))).astype(x.dtype)     # (in_size, Hp)
    b_pad = jnp.concatenate([bias[1:], bias[:1]])[None, :]              # (1, H)
    b_pad = jnp.pad(b_pad, ((0, 0), (0, pad_cols))).astype(jnp.float32)  # (1, Hp)

    # Constant lane masks (built host-side, resident in VMEM).
    dis_mask_np = np.zeros((1, Hp), np.float32)
    dis_mask_np[0, :n_harms] = 1.0
    amp_mask_np = np.zeros((1, Hp), np.float32)
    amp_mask_np[0, n_harms] = 1.0
    dis_mask = jnp.asarray(dis_mask_np)
    amp_mask = jnp.asarray(amp_mask_np)

    grid = (pl.cdiv(M, tm),)
    out = pl.pallas_call(
        _harmonic_head_kernel,
        out_shape=jax.ShapeDtypeStruct((M, Hp), out_dtype),
        grid_spec=pl.GridSpec(
            grid=grid,
            in_specs=[
                pl.BlockSpec((tm, in_size), lambda i: (i, 0)),
                pl.BlockSpec((in_size, Hp), lambda i: (0, 0)),
                pl.BlockSpec((1, Hp), lambda i: (0, 0)),
                pl.BlockSpec((1, Hp), lambda i: (0, 0)),
                pl.BlockSpec((1, Hp), lambda i: (0, 0)),
            ],
            out_specs=pl.BlockSpec((tm, Hp), lambda i: (i, 0)),
        ),
        compiler_params=pltpu.CompilerParams(
            dimension_semantics=("parallel",),
        ),
    )(x2, w_pad, b_pad, dis_mask, amp_mask)

    # Lane-aligned slices: dis starts at lane 0, amp is a single lane at n_harms.
    n_harm_dis_norm = out[:, :n_harms].reshape(B, T, n_harms)
    global_amp = out[:, n_harms:n_harms + 1].reshape(B, T, 1)
    return n_harm_dis_norm, global_amp


def _reference(x, weight, bias):
    z = jnp.einsum("bti,hi->bth", x, weight) + bias
    s = _SIG_MAX_VALUE * jax.nn.sigmoid(z) ** math.log(_SIG_EXPONENT) + _SIG_THRESHOLD
    amp = s[..., :1]
    dis = s[..., 1:]
    dis_norm = dis / (jnp.sum(dis, axis=-1, keepdims=True) + _SAFE_DIV_EPS)
    return dis_norm, amp


if __name__ == "__main__":
    key = jax.random.PRNGKey(0)
    B, T, in_size, n_harms = 2, 8, 32, 100

    k_x, k_w, k_b = jax.random.split(key, 3)
    x = jax.random.normal(k_x, (B, T, in_size), dtype=jnp.float32)
    # Deterministic "Linear" params (shapes match nn.Linear(in_size, n_harms+1)).
    bound = 1.0 / math.sqrt(in_size)
    weight = jax.random.uniform(k_w, (n_harms + 1, in_size), jnp.float32, -bound, bound)
    bias = jax.random.uniform(k_b, (n_harms + 1,), jnp.float32, -bound, bound)

    dis_norm, global_amp = harmonic_head(x, weight, bias)
    jax.block_until_ready((dis_norm, global_amp))

    ref_dis, ref_amp = _reference(x, weight, bias)
    assert dis_norm.shape == (B, T, n_harms)
    assert global_amp.shape == (B, T, 1)
    assert jnp.allclose(dis_norm, ref_dis, atol=1e-5, rtol=1e-5)
    assert jnp.allclose(global_amp, ref_amp, atol=1e-5, rtol=1e-5)

    print("KERNEL_OK")
</pallas_src>

<mosaic_0001>
module attributes {stable_mosaic.version = 11 : i64} {
  func.func @_harmonic_head_kernel(%arg0: i32, %arg1: memref<8x32xf32, #tpu.memory_space<vmem>>, %arg2: memref<32x128xf32, #tpu.memory_space<vmem>>, %arg3: memref<1x128xf32, #tpu.memory_space<vmem>>, %arg4: memref<1x128xf32, #tpu.memory_space<vmem>>, %arg5: memref<1x128xf32, #tpu.memory_space<vmem>>, %arg6: memref<8x128xf32, #tpu.memory_space<vmem>>) attributes {dimension_semantics = [#tpu.dimension_semantics<parallel>], iteration_bounds = array<i64: 2>, scalar_prefetch = 0 : i64, scratch_operands = 0 : i64, tpu.core_type = #tpu.core_type<tc>, window_params = [{transform_indices = @transform_0, window_bounds = array<i64: 8, 32>}, {pipeline_mode = #tpu.pipeline_mode<synchronous>, transform_indices = @transform_1, window_bounds = array<i64: 32, 128>}, {pipeline_mode = #tpu.pipeline_mode<synchronous>, transform_indices = @transform_2, window_bounds = array<i64: 1, 128>}, {pipeline_mode = #tpu.pipeline_mode<synchronous>, transform_indices = @transform_3, window_bounds = array<i64: 1, 128>}, {pipeline_mode = #tpu.pipeline_mode<synchronous>, transform_indices = @transform_4, window_bounds = array<i64: 1, 128>}, {transform_indices = @transform_5, window_bounds = array<i64: 8, 128>}]} {
    %c0 = arith.constant 0 : index
    %c0_0 = arith.constant 0 : index
    %0 = vector.load %arg1[%c0, %c0_0] : memref<8x32xf32, #tpu.memory_space<vmem>>, vector<8x32xf32>
    %c0_1 = arith.constant 0 : index
    %c0_2 = arith.constant 0 : index
    %1 = vector.load %arg2[%c0_1, %c0_2] : memref<32x128xf32, #tpu.memory_space<vmem>>, vector<32x128xf32>
    %cst = arith.constant dense<0.000000e+00> : vector<8x128xf32>
    %2 = tpu.matmul %0, %1, %cst {dimension_numbers = #tpu.dot_dimension_numbers<[1], [0], [0], [1], [0, 0, 1, 1], [], []>} : vector<8x32xf32>, vector<32x128xf32>, vector<8x128xf32> -> vector<8x128xf32>
    %c0_3 = arith.constant 0 : index
    %c0_4 = arith.constant 0 : index
    %3 = vector.load %arg3[%c0_3, %c0_4] : memref<1x128xf32, #tpu.memory_space<vmem>>, vector<1x128xf32>
    %4 = vector.broadcast %3 : vector<1x128xf32> to vector<8x128xf32>
    %5 = arith.addf %2, %4 : vector<8x128xf32>
    %cst_5 = arith.constant 0.000000e+00 : f32
    %6 = vector.broadcast %cst_5 : f32 to vector<8x128xf32>
    %7 = arith.subf %6, %5 : vector<8x128xf32>
    %cst_6 = arith.constant 0.000000e+00 : f32
    %8 = vector.broadcast %cst_6 : f32 to vector<8x128xf32>
    %9 = arith.maximumf %7, %8 : vector<8x128xf32>
    %10 = math.absf %5 : vector<8x128xf32>
    %cst_7 = arith.constant 0.000000e+00 : f32
    %11 = vector.broadcast %cst_7 : f32 to vector<8x128xf32>
    %12 = arith.subf %11, %10 : vector<8x128xf32>
    %13 = math.exp %12 : vector<8x128xf32>
    %14 = math.log1p %13 : vector<8x128xf32>
    %15 = arith.addf %9, %14 : vector<8x128xf32>
    %cst_8 = arith.constant -2.30258512 : f32
    %16 = vector.broadcast %cst_8 : f32 to vector<8x128xf32>
    %17 = arith.mulf %16, %15 : vector<8x128xf32>
    %18 = math.exp %17 : vector<8x128xf32>
    %cst_9 = arith.constant 2.000000e+00 : f32
    %19 = vector.broadcast %cst_9 : f32 to vector<8x128xf32>
    %20 = arith.mulf %19, %18 : vector<8x128xf32>
    %cst_10 = arith.constant 1.000000e-07 : f32
    %21 = vector.broadcast %cst_10 : f32 to vector<8x128xf32>
    %22 = arith.addf %20, %21 : vector<8x128xf32>
    %c0_11 = arith.constant 0 : index
    %c0_12 = arith.constant 0 : index
    %23 = vector.load %arg4[%c0_11, %c0_12] : memref<1x128xf32, #tpu.memory_space<vmem>>, vector<1x128xf32>
    %24 = vector.broadcast %23 : vector<1x128xf32> to vector<8x128xf32>
    %25 = arith.mulf %22, %24 : vector<8x128xf32>
    %cst_13 = arith.constant dense<0.000000e+00> : vector<8xf32>
    %26 = vector.multi_reduction <add>, %25, %cst_13 [1] : vector<8x128xf32> to vector<8xf32>
    %27 = vector.shape_cast %26 : vector<8xf32> to vector<8x1xf32>
    %cst_14 = arith.constant 1.000000e-07 : f32
    %28 = vector.broadcast %cst_14 : f32 to vector<8x1xf32>
    %29 = arith.addf %27, %28 : vector<8x1xf32>
    %cst_15 = arith.constant 1.000000e+00 : f32
    %30 = vector.broadcast %cst_15 : f32 to vector<8x1xf32>
    %31 = arith.divf %30, %29 : vector<8x1xf32>
    %c0_16 = arith.constant 0 : index
    %c0_17 = arith.constant 0 : index
    %32 = vector.load %arg5[%c0_16, %c0_17] : memref<1x128xf32, #tpu.memory_space<vmem>>, vector<1x128xf32>
    %33 = vector.broadcast %32 : vector<1x128xf32> to vector<8x128xf32>
    %34 = arith.mulf %22, %33 : vector<8x128xf32>
    %35 = vector.broadcast %31 : vector<8x1xf32> to vector<8x128xf32>
    %36 = arith.mulf %25, %35 : vector<8x128xf32>
    %37 = arith.addf %34, %36 : vector<8x128xf32>
    %c0_18 = arith.constant 0 : index
    %c0_19 = arith.constant 0 : index
    %38 = vector.load %arg6[%c0_18, %c0_19] : memref<8x128xf32, #tpu.memory_space<vmem>>, vector<8x128xf32>
    tpu.vector_store %arg6[%c0_18, %c0_19], %37 {strides = array<i32>} : memref<8x128xf32, #tpu.memory_space<vmem>>, vector<8x128xf32>,
    return
  }
  func.func @transform_0(%arg0: i32) -> (i32, i32) {
    %c0_i32 = arith.constant 0 : i32
    %c0_i32_0 = arith.constant 0 : i32
    return %arg0, %c0_i32 : i32, i32
  }
  func.func @transform_1(%arg0: i32) -> (i32, i32) {
    %c0_i32 = arith.constant 0 : i32
    %c0_i32_0 = arith.constant 0 : i32
    %c0_i32_1 = arith.constant 0 : i32
    return %c0_i32, %c0_i32_0 : i32, i32
  }
  func.func @transform_2(%arg0: i32) -> (i32, i32) {
    %c0_i32 = arith.constant 0 : i32
    %c0_i32_0 = arith.constant 0 : i32
    %c0_i32_1 = arith.constant 0 : i32
    return %c0_i32, %c0_i32_0 : i32, i32
  }
  func.func @transform_3(%arg0: i32) -> (i32, i32) {
    %c0_i32 = arith.constant 0 : i32
    %c0_i32_0 = arith.constant 0 : i32
    %c0_i32_1 = arith.constant 0 : i32
    return %c0_i32, %c0_i32_0 : i32, i32
  }
  func.func @transform_4(%arg0: i32) -> (i32, i32) {
    %c0_i32 = arith.constant 0 : i32
    %c0_i32_0 = arith.constant 0 : i32
    %c0_i32_1 = arith.constant 0 : i32
    return %c0_i32, %c0_i32_0 : i32, i32
  }
  func.func @transform_5(%arg0: i32) -> (i32, i32) {
    %c0_i32 = arith.constant 0 : i32
    %c0_i32_0 = arith.constant 0 : i32
    return %arg0, %c0_i32 : i32, i32
  }
}

</mosaic_0001>

<bundles_post_ra>
// kernel: tpu_custom_call.1
= control target key start
LH: loop header
LB: loop body
LE: loop exit
PB: predicated region body
PF: predicated region fallthrough
CT: control target
= control target key end

     0   :  { %10 = vsyncpa [#allocation3], 0  ;;  %s967_s0 = inlined_call_operand.hbm [shape: f32[16,32], index: 0, kind: input, shape index: {}]   ;;  %s968_s1 = inlined_call_operand.hbm [shape: f32[32,128], index: 1, kind: input, shape index: {}]   ;;  %s969_s2 = inlined_call_operand.vmem [shape: f32[1,128], index: 2, kind: input, shape index: {}]   ;;  %s970_s3 = inlined_call_operand.vmem [shape: f32[1,128], index: 3, kind: input, shape index: {}]   ;;  %s971_s4 = inlined_call_operand.vmem [shape: f32[1,128], index: 4, kind: input, shape index: {}]   ;;  %s972_s5 = inlined_call_operand.hbm [shape: f32[16,128], index: 5, kind: output, shape index: {}]  }
   0x1   :  { %12 = vsyncpa [#allocation3 + $0x1], 0 }
   0x2   :  { %13 = vsyncpa [#allocation6], 0 }
   0x3   :  { %14 = vsyncpa [#allocation4], 0 }
   0x4   :  { %16 = vsyncpa [#allocation4 + $0x1], 0  ;;  %s758_s18 = smov 0   ;;  %s760_s19 = smov 0  }
   0x5   :  { %s762_s20 = smov 0   ;;  %s764_s21 = smov 0  }
   0x6 LB: > { %s779_s22 = sadd.s32 4294967295, %s718_s21   ;;  %s480_s23 = sadd.s32 4294967294, %s718_s21   ;;  %s718_s21 = sphi %s764_s21, %s992_s21   ;;  %s714_s20 = sphi %s762_s20, %s991_s20   ;;  %s710_s19 = sphi %s760_s19, %s990_s19   ;;  %s706_s18 = sphi %s758_s18, %s989_s18  }
   0x7   : > { %p42_p0 = scmp.ne.s32.totalorder %s710_s19, %s706_s18  ;;  %p973_p1 = scmp.eq.s32.totalorder %s779_s22, 0 }
   0x8   : > { %p156_p3 = scmp.eq.s32.totalorder %s480_s23, 1  ;;  %p481_p5 = scmp.ge.s32.totalorder %s718_s21, 1 }
   0x9   : > { %p788_p4 = por %p973_p1, %p42_p0  ;;  %p163_p7 = scmp.lt.s32.totalorder %s718_s21, 3 }
   0xa   : > { %p793_p6 = por %p156_p3, %p42_p0  ;;  %s720_s27 = smov [#allocation5]  }
   0xb   : > { %s976_s24 = scalar_select %p788_p4, 1, 0 }
   0xc   : > { %s977_s25 = scalar_select %p793_p6, 1, 0 }
   0xd   : > { %p798_p8 = pnand %p481_p5, %p163_p7  ;;  %s175_s28 = sshll.u32 %s720_s27, 4  ;;  %s802_s28 = int_to_ptr.vmem [resolvable:$true] %s175_s28 }
   0xe   : > { %s814_s30 = sadd.s32 1, %s718_s21   ;;  %s29_s6 = sadd.s32 1, %s714_s20 }
   0xf   : > { %s978_s26 = scalar_select %p798_p8, 1, 0 }
  0x10   : > { %p528_p9 = pneg %p798_p8  ;;  %s26_s7 = ssub.s32 %s718_s21, %s814_s30 }
  0x11   : > { %s590_s10 = scalar_lea.hbm %s968_s1, 512 }
  0x12   : > { %p809_p11 = pnand %p528_p9, %p973_p1  ;;  %p591_p12 = scmp.ne.s32.totalorder %s968_s1, %s590_s10 }
  0x13   : > { %p597_p5 = scmp.lt.u32.totalorder %s590_s10, %s968_s1 }
  0x14   : > { %p592_p13 = pneg %p809_p11 }
  0x16   : > { %p593_p0 = pnand %p592_p13, %p591_p12 }
  0x18   : > { %p594_p3 = pneg %p593_p0 }
  0x1a   : > { %p599_p7 = pnand %p597_p5, %p594_p3 }
  0x1c   : > { %602 = shalt.err (!%p599_p7)
}
  0x1d   : > { %s603_s15 = scalar_lea.vmem %s802_s28, 512  ;;  %p611_p2 = scmp.lt.s32.totalorder %s802_s28, %s802_s28 }
  0x1e   : > { %p604_p9 = scmp.ne.s32.totalorder %s802_s28, %s603_s15  ;;  %p612_p6 = scmp.lt.s32.totalorder %s603_s15, %s603_s15 }
  0x20   : > { %p606_p10 = pnand %p604_p9, %p592_p13  ;;  %p613_p4 = por %p612_p6, %p611_p2 }
  0x22   : > { %p607_p1 = pneg %p606_p10 }
  0x24   : > { %p614_p8 = pnand %p613_p4, %p607_p1 }
  0x26   : > { %617 = shalt.err (!%p614_p8)
}
  0x27   : > { %s721_s16 = smov 128   ;;  %s722_s17 = smov 8  }
  0x28   : > { %531 = dma.hbm_to_vmem [thread:$0]  (!%p809_p11), %s968_s1, 512, %s802_s28, [#allocation6], %s721_s16, %s721_s16, %s722_s17  }
  0x29   : > { %p27_p2 = scmp.eq.s32.totalorder %s26_s7, 0  ;;  %p36_p1 = scmp.ne.s32.totalorder %s714_s20, %s710_s19 }
  0x2a   : > { %p37_p4 = scmp.eq.s32.totalorder %s718_s21, 0  ;;  %p541_p6 = scmp.lt.s32.totalorder %s718_s21, 2 }
  0x2b   : > { %s845_s8 = scalar_select %p27_p2, %s714_s20, %s29_s6  }
  0x2c   : > { %p38_p8 = por %p37_p4, %p36_p1  ;;  %p980_p10 = scmp.eq.s32.totalorder %s779_s22, 1 }
  0x2d   : > { %s198_s10 = sand.u32 1, %s714_s20   ;;  %s485_s11 = sshll.u32 %s718_s21, 7 }
  0x2e   : > { %p849_p12 = por %p980_p10, %p36_p1  ;;  %s484_s12 = sshll.u32 %s198_s10, 3 }
  0x2f   : > { %s858_s14 = scalar_lea.hbm %s967_s0, %s485_s11  ;;  %s202_s28 = scalar_lea.vmem [#allocation2], %s484_s12 }
  0x30   : > { %s209_s6 = sshll.u32 %s202_s28, 4  ;;  %p860_p11 = pnand %p541_p6, %p38_p8  ;;  %s864_s6 = int_to_ptr.vmem [resolvable:$true] %s209_s6 }
  0x31   : > { %s199_s15 = scalar_lea.sflag [#allocation3], %s198_s10  ;;  %s618_s16 = scalar_lea.hbm %s858_s14, 128 }
  0x32   : > { %p619_p13 = scmp.ne.s32.totalorder %s858_s14, %s618_s16  ;;  %p620_p0 = pneg %p860_p11 }
  0x33   : > { %s623_s27 = scalar_lea.hbm %s967_s0, 256  ;;  %p624_p7 = scmp.lt.u32.totalorder %s858_s14, %s967_s0 }
  0x34   : > { %p621_p3 = pnand %p620_p0, %p619_p13  ;;  %p625_p9 = scmp.lt.u32.totalorder %s623_s27, %s618_s16 }
  0x35   : > { %p627_p1 = scmp.lt.u32.totalorder %s618_s16, %s858_s14 }
  0x36   : > { %p622_p5 = pneg %p621_p3  ;;  %p626_p2 = por %p625_p9, %p624_p7 }
  0x38   : > { %p628_p4 = por %p627_p1, %p626_p2 }
  0x3a   : > { %p629_p6 = pnand %p628_p4, %p622_p5 }
  0x3c   : > { %632 = shalt.err (!%p629_p6)
}
  0x3d   : > { %s633_s10 = scalar_lea.vmem %s864_s6, 128  ;;  %s723_s29 = smov [#allocation2]  }
  0x3e   : > { %p634_p8 = scmp.ne.s32.totalorder %s864_s6, %s633_s10  ;;  %s638_s13 = sshll.u32 %s723_s29, 4  ;;  %s639_s13 = int_to_ptr.vmem [resolvable:$false] %s638_s13 }
  0x3f   : > { %s640_s28 = scalar_lea.vmem %s639_s13, 256  ;;  %p641_p3 = scmp.lt.s32.totalorder %s864_s6, %s639_s13 }
  0x40   : > { %p636_p10 = pnand %p634_p8, %p620_p0  ;;  %p642_p7 = scmp.lt.s32.totalorder %s640_s28, %s633_s10 }
  0x42   : > { %p637_p13 = pneg %p636_p10  ;;  %p643_p9 = por %p642_p7, %p641_p3 }
  0x44   : > { %p644_p2 = pnand %p643_p9, %p637_p13 }
  0x46   : > { %647 = shalt.err (!%p644_p2)
}
  0x47   : > { %535 = dma.hbm_to_vmem [thread:$0]  (!%p860_p11), %s858_s14, 128, %s864_s6, %s199_s15  }
  0x48   : > { %p983_p5 = scmp.ne.s32.totalorder %s978_s26, 0 }
  0x49   : > { %s894_s16 = sand.u32 (!%p983_p5), 1, %s710_s19   ;;  %p984_p0 = scmp.ne.s32.totalorder (!%p983_p5), %s976_s24, 0 }
  0x4a   : > { %218 = sbr.rel (%p983_p5) target bundleno = 538 (0x21a), region = 40  ;;  %s487_s17 = sshll.u32 (!%p983_p5), %s894_s16, 3 }
  0x4b   : > { %s221_s23 = scalar_lea.sflag (!%p983_p5), [#allocation3], %s894_s16  ;;  %s224_s27 = scalar_lea.vmem (!%p983_p5), [#allocation2], %s487_s17 }
  0x51   : > { %693 = dma.done.wait (%p984_p0), %s221_s23, 128  }
  0x52   : > { %695 = vsyncadd (%p984_p0), %s221_s23, 4294967168  ;;  %p985_p11 = scmp.eq.s32.totalorder %s779_s22, 0 }
  0x54   : > { %697 = dma.done.wait (%p985_p11), [#allocation6], 512   ;;  %p986_p1 = pmov %p985_p11 }
  0x55   : > { %v724_v0 = vmov 0.0|0.0   ;;  %vm725_vm0 = vmmov 0   ;;  %v726_v1 = vmov 0.0   ;;  %v256_v2 = vld [vmem:[#allocation5] sm:$0xff]  ;;  %v257_v3 = vld [vmem:[#allocation5 + $0x8] sm:$0xff]  ;;  %v258_v4 = vld [vmem:[#allocation5 + $0x10] sm:$0xff] }
  0x56   : > { %699 = vsyncadd (%p986_p1), [#allocation6], 4294966784  ;;  %514 = vmatprep.subr.bf16.mxu0 %v724_v0  ;;  %511 = vmatprep.mubr.msk.f32.mxu0 %vm725_vm0, %v726_v1  ;;  %v515_v5 = vpack.c.bf16 %v257_v3, %v256_v2  ;;  %v259_v6 = vld [vmem:[#allocation5 + $0x18] sm:$0xff]  ;;  %vm267_vm1 = vcmask 261120   ;;  %v490_v9 = vld [vmem:[%s969_s2] ss:$0 sm:$0xff] }
  0x57   : > { %v518_v7 = vpack.c.bf16 %v259_v6, %v258_v4  ;;  %v255_v8 = vld [vmem:[%s224_s27] sm:$0xff]  ;;  %s495_s11 = sshll.u32 %s779_s22, 7  ;;  %s254_s12 = scalar_lea.vmem [#allocation7], %s487_s17 }
  0x58   : > { %516 = vmatpush3.bf16.msra.mxu0 %v515_v5  ;;  %v492_v32 = vld [vmem:[%s970_s3] ss:$0 sm:$0xff]  ;;  %s400_s10 = sshll.u32 %s254_s12, 4  ;;  %s923_s28 = scalar_lea.hbm %s972_s5, %s495_s11  ;;  %s925_s10 = int_to_ptr.vmem [resolvable:$true] %s400_s10 }
  0x59   : > { %517 = vmatprep.subr.bf16.mxu0 %v724_v0  ;;  %v493_v37 = vld [vmem:[%s971_s4] ss:$0 sm:$0xff]  ;;  %s387_s23 = scalar_lea.sflag [#allocation4], %s894_s16  ;;  %s648_s27 = scalar_lea.vmem %s925_s10, 128 }
  0x5a   : > { %p649_p4 = scmp.ne.s32.totalorder %s925_s10, %s648_s27  ;;  %s727_s22 = smov [#allocation7]  }
  0x5b   : > { %s652_s17 = sshll.u32 %s727_s22, 4  ;;  %s653_s17 = int_to_ptr.vmem [resolvable:$false] %s652_s17 }
  0x5c   : > { %519 = vmatpush3.bf16.msra.mxu0 %v518_v7  ;;  %p650_p6 = pnand %p649_p4, %p849_p12  ;;  %s654_s24 = scalar_lea.vmem %s653_s17, 256 }
  0x5d   : > { %p655_p10 = scmp.lt.s32.totalorder %s925_s10, %s653_s17  ;;  %p656_p13 = scmp.lt.s32.totalorder %s654_s24, %s648_s27 }
  0x5e   : > { %p651_p8 = pneg %p650_p6 }
  0x5f   : > { %512 = vmatmul.mubr.msk.f32.vlgmr.msra.gmra.mrb[0].mxu0 %vm267_vm1, %v255_v8  ;;  %p657_p3 = por %p656_p13, %p655_p10 }
  0x61   : > { %p658_p7 = pnand %p657_p3, %p651_p8 }
 0x132   : > { %v337_v10 = vpop.f32.mrb[0].mxu0 }
 0x133   : > { %v338_v11 = vadd.f32 %v490_v9, %v337_v10  ;;  %v513_v12 = vpop.f32.mrb[1].mxu0 }
 0x135   : > { %v343_v13 = vand.u32 2147483647, %v338_v11  ;;  %v341_v20 = vsub.f32 0.0, %v338_v11 }
 0x137   : > { %v344_v14 = vsub.f32 0.0, %v343_v13  ;;  %v342_v25 = vmax.f32 %v341_v20, 0.0 }
 0x139   : > { %v345_v15 = vmul.f32 1.442695, %v344_v14 }
 0x13b   : > { %582 = vpow2.f32 %v345_v15 }
 0x145   : > { %v583_v16 = vpop.eup %582 }
 0x146   : > { %v347_v17 = vadd.f32 1.0, %v583_v16  ;;  %v350_v18 = vmul.f32 -0.5, %v583_v16  ;;  %v353_v21 = vand.u32 2147483647, %v583_v16 }
 0x148   : > { %584 = vlog2.f32 %v347_v17  ;;  %v351_v19 = vadd.f32 1.0, %v350_v18  ;;  %vm354_vm2 = vcmp.lt.f32.partialorder %v353_v21, 0.0004427343 }
 0x14a   : > { %v352_v24 = vmul.f32 %v583_v16, %v351_v19 }
 0x152   : > { %v585_v22 = vpop.eup %584 }
 0x153   : > { %v349_v23 = vmul.f32 0.6931472, %v585_v22 }
 0x155   : > { %v355_v26 = vsel %vm354_vm2, %v352_v24, %v349_v23 }
 0x156   : > { %v356_v27 = vadd.f32 %v355_v26, %v342_v25 }
 0x158   : > { %v357_v28 = vmul.f32 -2.3025851, %v356_v27 }
 0x15a   : > { %v358_v29 = vmul.f32 1.442695, %v357_v28 }
 0x15c   : > { %586 = vpow2.f32 %v358_v29 }
 0x166   : > { %v587_v30 = vpop.eup %586 }
 0x167   : > { %v360_v31 = vmul.f32 2.0, %v587_v30 }
 0x169   : > { %v361_v33 = vadd.f32 1e-07, %v360_v31 }
 0x16b   : > { %v369_v34 = vmul.f32 %v492_v32, %v361_v33  ;;  %v382_v39 = vmul.f32 %v493_v37, %v361_v33 }
 0x16d   : > { %370 = vadd.xlane.f32.xlu0 %v369_v34 }
 0x1fa   : > { %v371_v35 = vpop.xlane.xlu0 %370 }
 0x1fb   : > { %v372_v36 = vadd.f32 1e-07, %v371_v35 }
 0x1fd   : > { %588 = vrcp.f32 %v372_v36 }
 0x207   : > { %v589_v38 = vpop.eup %588 }
 0x208   : > { %v383_v40 = vmul.f32 %v589_v38, %v369_v34 }
 0x20a   : > { %v384_v41 = vadd.f32 %v383_v40, %v382_v39 }
 0x20c   : > { %385 = vst [vmem:[%s254_s12] sm:$0xff] %v384_v41 }
 0x20d   : > { %661 = shalt.err (!%p658_p7)
}
 0x20e   : > { %s662_s16 = scalar_lea.hbm %s923_s28, 128  ;;  %s666_s6 = scalar_lea.hbm %s972_s5, 256 }
 0x20f   : > { %p663_p9 = scmp.ne.s32.totalorder %s923_s28, %s662_s16  ;;  %p667_p0 = scmp.lt.u32.totalorder %s923_s28, %s972_s5 }
 0x210   : > { %p668_p11 = scmp.lt.u32.totalorder %s666_s6, %s662_s16  ;;  %p670_p4 = scmp.lt.u32.totalorder %s662_s16, %s923_s28 }
 0x211   : > { %p664_p2 = pnand %p663_p9, %p849_p12 }
 0x212   : > { %p669_p1 = por %p668_p11, %p667_p0 }
 0x213   : > { %p665_p5 = pneg %p664_p2 }
 0x214   : > { %p671_p6 = por %p670_p4, %p669_p1 }
 0x216   : > { %p672_p8 = pnand %p671_p6, %p665_p5 }
 0x218   : > { %675 = shalt.err (!%p672_p8)
}
 0x219   : > { %526 = dma.vmem_to_hbm [thread:$0]  (%p849_p12), %s925_s10, 128, %s923_s28, %s387_s23  }
 0x21a PF: > { %s412_s11 = sand.u32 1, %s706_s18   ;;  %p987_p10 = scmp.ne.s32.totalorder %s977_s25, 0 }
 0x21b   : > { %p988_p13 = scmp.ge.s32.totalorder %s718_s21, 2  ;;  %s413_s12 = scalar_lea.sflag [#allocation4], %s412_s11 }
 0x21d   : > { %p537_p3 = pnand %p988_p13, %p987_p10 }
 0x21f   : > { %701 = dma.done.wait (!%p537_p3), %s413_s12, 128  }
 0x220   : > { %703 = vsyncadd (!%p537_p3), %s413_s12, 4294967168  ;;  %p19_p7 = scmp.ge.s32.totalorder %s814_s30, 4   ;;  %s989_s18 = smov %s710_s19 }
 0x221   : > { %s990_s19 = smov %s714_s20  ;;  %s991_s20 = smov %s845_s8 }
 0x222   : > { %s992_s21 = smov %s814_s30  ;;  %21 = sbr.rel (!%p19_p7) target bundleno = 6 (0x6), region = 89 }
 0x229   :  { %418 = vsyncpa [#allocation3], 1 }
 0x22a   :  { %420 = vsyncpa [#allocation3 + $0x1], 1 }
 0x22b   :  { %421 = vsyncpa [#allocation6], 1 }
 0x22c   :  { %422 = vsyncpa [#allocation4], 1 }
 0x22d   :  { %424 = vsyncpa [#allocation4 + $0x1], 1 }

</bundles_post_ra>
